<compile_context>
chip_gen: v6e
topology: v6e:2x2x1
jax: 0.10.0
libtpu: 0.0.40
codegen_flags: <defaults>
</compile_context>

<pallas_src>
import functools

import jax
import jax.numpy as jnp
from jax.experimental import pallas as pl
from jax.experimental.pallas import tpu as pltpu

LOG_STD_MAX = 2.0
LOG_STD_MIN = -5.0
_LOGSTD_C1 = 0.5 * (LOG_STD_MAX - LOG_STD_MIN)          # 3.5
_LOGSTD_C0 = LOG_STD_MIN + _LOGSTD_C1                   # -1.5


def _round_up(x, m):
    return ((x + m - 1) // m) * m


def actor_kernel(obs_t_ref, w1_t_ref, b1_t_ref, w2_t_ref, b2_t_ref,
                 wh_t_ref, bh_t_ref, out_ref, *, act_dim):
    """Batch-on-lanes forward: every operand/intermediate is (features, TB)."""
    x = obs_t_ref[...].astype(jnp.bfloat16)                        # (obs_dim, TB)

    # fc1 + relu : (hidden, obs_dim) @ (obs_dim, TB) -> (hidden, TB)
    h1 = jnp.dot(w1_t_ref[...], x, preferred_element_type=jnp.float32) + b1_t_ref[...]
    h1 = jnp.maximum(h1, 0.0)

    # fc2 + relu : (hidden, hidden) @ (hidden, TB) -> (hidden, TB)
    h2 = jnp.dot(w2_t_ref[...], h1.astype(jnp.bfloat16),
                 preferred_element_type=jnp.float32) + b2_t_ref[...]
    h2 = jnp.maximum(h2, 0.0)

    # fused head: rows [0, act_dim) -> mean, rows [act_dim, 2*act_dim) -> log_std
    head = jnp.dot(wh_t_ref[...], h2.astype(jnp.bfloat16),
                   preferred_element_type=jnp.float32) + bh_t_ref[...]  # (2*act_dim, TB)

    # tanh runs on the EUP; apply the log_std affine only on log_std rows via a
    # sublane-index select (no cross-lane/sublane data movement).
    ls = _LOGSTD_C0 + _LOGSTD_C1 * jnp.tanh(head)
    row = jax.lax.broadcasted_iota(jnp.int32, head.shape, 0)
    out_ref[...] = jnp.where(row >= act_dim, ls, head)


def prepare_actor_params(params):
    """One-time (per param update) weight prep hoisted out of the forward path:
    fuse head weights [Wm | Ws], transpose for the batch-on-lanes layout, and
    cast matmul weights to bf16 (f32 biases)."""
    wh = jnp.concatenate([params["wm"], params["ws"]], axis=1)   # (hidden, 2*act_dim)
    bh = jnp.concatenate([params["bm"], params["bs"]], axis=1)   # (1, 2*act_dim)
    return dict(
        w1_t=jnp.asarray(params["w1"].T, jnp.bfloat16),   # (hidden, obs_dim)
        b1_t=jnp.asarray(params["b1"].T, jnp.float32),     # (hidden, 1)
        w2_t=jnp.asarray(params["w2"].T, jnp.bfloat16),    # (hidden, hidden)
        b2_t=jnp.asarray(params["b2"].T, jnp.float32),     # (hidden, 1)
        wh_t=jnp.asarray(wh.T, jnp.bfloat16),               # (2*act_dim, hidden)
        bh_t=jnp.asarray(bh.T, jnp.float32),                 # (2*act_dim, 1)
    )


def _vmem_bytes_estimate(tb, obs_dim, hidden, head_dim):
    f32, bf16 = 4, 2
    io = 2 * tb * obs_dim * f32 + 2 * tb * head_dim * f32            # double-buffered obs/out
    w = 2 * bf16 * (hidden * obs_dim + hidden * hidden + head_dim * hidden)
    b = 2 * f32 * (2 * hidden + head_dim)
    act = tb * (2 * hidden * (f32 + bf16) + 2 * head_dim * f32)      # h1/h2 (+bf16 copies), head/out
    return io + w + b + act


def actor_forward(obs, prepared, *, max_batch_tile=4096):
    """obs: [B, obs_dim] float32. prepared: output of prepare_actor_params().
    Returns (mean, log_std), both [B, act_dim] float32."""
    B, obs_dim = obs.shape
    hidden = prepared["w1_t"].shape[0]
    head_dim = prepared["wh_t"].shape[0]
    act_dim = head_dim // 2

    # Batch-on-lanes: transpose obs once here (produce it transposed upstream
    # if possible) so the kernel's lane dim is the batch tile.
    obs_t = obs.T                                           # (obs_dim, B)

    # Batch tiling: lane-dense tiles (multiple of 128), as few grid steps as
    # possible; for large batches keep >= 2 steps so v7x uses both TensorCores.
    b_pad = _round_up(B, 128)
    tb = min(max_batch_tile, b_pad)
    if b_pad >= 1024 and (b_pad // tb) < 2:
        tb = _round_up((b_pad + 1) // 2, 128)
    b_pad = _round_up(b_pad, tb)
    if b_pad != B:
        obs_t = jnp.pad(obs_t, ((0, 0), (0, b_pad - B)))
    grid = (b_pad // tb,)

    # Raise the scoped-VMEM limit past v5e's 16 MiB default when tiles get big
    # (capped well below v7x's 64 MiB physical VMEM).
    est = _vmem_bytes_estimate(tb, obs_dim, hidden, head_dim)
    vmem_limit = int(min(max(2 * est, 32 * 1024 * 1024), 56 * 1024 * 1024))

    out_t = pl.pallas_call(
        functools.partial(actor_kernel, act_dim=act_dim),
        out_shape=jax.ShapeDtypeStruct((head_dim, b_pad), jnp.float32),
        grid=grid,
        in_specs=[
            pl.BlockSpec((obs_dim, tb), lambda i: (0, i)),        # obsᵀ: tiled over batch lanes
            pl.BlockSpec((hidden, obs_dim), lambda i: (0, 0)),    # W1ᵀ: VMEM-resident
            pl.BlockSpec((hidden, 1), lambda i: (0, 0)),          # b1ᵀ
            pl.BlockSpec((hidden, hidden), lambda i: (0, 0)),     # W2ᵀ
            pl.BlockSpec((hidden, 1), lambda i: (0, 0)),          # b2ᵀ
            pl.BlockSpec((head_dim, hidden), lambda i: (0, 0)),   # [Wm|Ws]ᵀ (fused head)
            pl.BlockSpec((head_dim, 1), lambda i: (0, 0)),        # [bm|bs]ᵀ
        ],
        out_specs=pl.BlockSpec((head_dim, tb), lambda i: (0, i)),  # lane-dense output slab
        compiler_params=pltpu.CompilerParams(
            dimension_semantics=("parallel",),     # batch axis -> both TCs on v7x
            vmem_limit_bytes=vmem_limit),
    )(obs_t, prepared["w1_t"], prepared["b1_t"], prepared["w2_t"],
      prepared["b2_t"], prepared["wh_t"], prepared["bh_t"])

    mean = out_t[:act_dim, :B].T
    log_std = out_t[act_dim:, :B].T
    return mean, log_std


def init_params(key, obs_dim, act_dim, hidden_dim):
    """Mimics PyTorch nn.Linear default init (uniform +/- 1/sqrt(fan_in)).
    Weights stored as (in_features, out_features)."""
    def linear(key, fan_in, fan_out):
        kw, kb = jax.random.split(key)
        bound = 1.0 / jnp.sqrt(fan_in)
        w = jax.random.uniform(kw, (fan_in, fan_out), jnp.float32, -bound, bound)
        b = jax.random.uniform(kb, (1, fan_out), jnp.float32, -bound, bound)
        return w, b

    k1, k2, k3, k4 = jax.random.split(key, 4)
    w1, b1 = linear(k1, obs_dim, hidden_dim)
    w2, b2 = linear(k2, hidden_dim, hidden_dim)
    wm, bm = linear(k3, hidden_dim, act_dim)
    ws, bs = linear(k4, hidden_dim, act_dim)
    return dict(w1=w1, b1=b1, w2=w2, b2=b2, wm=wm, bm=bm, ws=ws, bs=bs)


def actor_forward_ref_bf16(obs, p):
    """Pure-JAX reference with the same bf16-input / f32-accumulate recipe."""
    c = lambda a: a.astype(jnp.bfloat16)
    h1 = jnp.maximum(jnp.dot(c(obs), c(p["w1"]),
                             preferred_element_type=jnp.float32) + p["b1"], 0.0)
    h2 = jnp.maximum(jnp.dot(c(h1), c(p["w2"]),
                             preferred_element_type=jnp.float32) + p["b2"], 0.0)
    mean = jnp.dot(c(h2), c(p["wm"]), preferred_element_type=jnp.float32) + p["bm"]
    z = jnp.dot(c(h2), c(p["ws"]), preferred_element_type=jnp.float32) + p["bs"]
    ls = LOG_STD_MIN + 0.5 * (LOG_STD_MAX - LOG_STD_MIN) * (jnp.tanh(z) + 1.0)
    return mean, ls


def actor_forward_ref_f32(obs, p):
    """Full-precision reference (PyTorch-equivalent semantic check)."""
    h1 = jnp.maximum(obs @ p["w1"] + p["b1"], 0.0)
    h2 = jnp.maximum(h1 @ p["w2"] + p["b2"], 0.0)
    mean = h2 @ p["wm"] + p["bm"]
    ls = jnp.tanh(h2 @ p["ws"] + p["bs"])
    ls = LOG_STD_MIN + 0.5 * (LOG_STD_MAX - LOG_STD_MIN) * (ls + 1.0)
    return mean, ls


if __name__ == "__main__":
    # Small shapes consistent with the module: obs_dim=16, act_dim=4, hidden=32, batch=2.
    B, OBS_DIM, ACT_DIM, HIDDEN = 2, 16, 4, 32

    key = jax.random.PRNGKey(0)
    kp, ko = jax.random.split(key)
    params = init_params(kp, OBS_DIM, ACT_DIM, HIDDEN)
    obs = jax.random.normal(ko, (B, OBS_DIM), jnp.float32)

    # Weight prep happens once (per param update), not per forward call.
    prepared = prepare_actor_params(params)

    forward = jax.jit(actor_forward)
    mean, log_std = forward(obs, prepared)
    jax.block_until_ready((mean, log_std))

    assert mean.shape == (B, ACT_DIM) and log_std.shape == (B, ACT_DIM)

    # Tight check against a reference using the same bf16-input recipe.
    mean_rb, ls_rb = actor_forward_ref_bf16(obs, params)
    assert bool(jnp.allclose(mean, mean_rb, atol=2e-3, rtol=2e-3))
    assert bool(jnp.allclose(log_std, ls_rb, atol=2e-3, rtol=2e-3))

    # Looser semantic check against the full-precision PyTorch-equivalent math.
    mean_rf, ls_rf = actor_forward_ref_f32(obs, params)
    assert bool(jnp.allclose(mean, mean_rf, atol=5e-2, rtol=5e-2))
    assert bool(jnp.allclose(log_std, ls_rf, atol=5e-2, rtol=5e-2))

    # log_std must lie in [LOG_STD_MIN, LOG_STD_MAX] (tanh-bounded rescale).
    assert bool(jnp.all(log_std >= LOG_STD_MIN) & jnp.all(log_std <= LOG_STD_MAX))

    print("KERNEL_OK")
</pallas_src>

<mosaic_0001>
module attributes {stable_mosaic.version = 11 : i64} {
  func.func @actor_kernel(%arg0: i32, %arg1: memref<16x128xf32, #tpu.memory_space<vmem>>, %arg2: memref<32x16xbf16, #tpu.memory_space<vmem>>, %arg3: memref<32x1xf32, #tpu.memory_space<vmem>>, %arg4: memref<32x32xbf16, #tpu.memory_space<vmem>>, %arg5: memref<32x1xf32, #tpu.memory_space<vmem>>, %arg6: memref<8x32xbf16, #tpu.memory_space<vmem>>, %arg7: memref<8x1xf32, #tpu.memory_space<vmem>>, %arg8: memref<8x128xf32, #tpu.memory_space<vmem>>) attributes {dimension_semantics = [#tpu.dimension_semantics<parallel>], iteration_bounds = array<i64: 1>, scalar_prefetch = 0 : i64, scratch_operands = 0 : i64, tpu.core_type = #tpu.core_type<tc>, window_params = [{transform_indices = @transform_0, window_bounds = array<i64: 16, 128>}, {pipeline_mode = #tpu.pipeline_mode<synchronous>, transform_indices = @transform_1, window_bounds = array<i64: 32, 16>}, {pipeline_mode = #tpu.pipeline_mode<synchronous>, transform_indices = @transform_2, window_bounds = array<i64: 32, 1>}, {pipeline_mode = #tpu.pipeline_mode<synchronous>, transform_indices = @transform_3, window_bounds = array<i64: 32, 32>}, {pipeline_mode = #tpu.pipeline_mode<synchronous>, transform_indices = @transform_4, window_bounds = array<i64: 32, 1>}, {pipeline_mode = #tpu.pipeline_mode<synchronous>, transform_indices = @transform_5, window_bounds = array<i64: 8, 32>}, {pipeline_mode = #tpu.pipeline_mode<synchronous>, transform_indices = @transform_6, window_bounds = array<i64: 8, 1>}, {transform_indices = @transform_7, window_bounds = array<i64: 8, 128>}]} {
    %c0 = arith.constant 0 : index
    %c0_0 = arith.constant 0 : index
    %0 = vector.load %arg1[%c0, %c0_0] : memref<16x128xf32, #tpu.memory_space<vmem>>, vector<16x128xf32>
    %1 = arith.truncf %0 : vector<16x128xf32> to vector<16x128xbf16>
    %c0_1 = arith.constant 0 : index
    %c0_2 = arith.constant 0 : index
    %2 = vector.load %arg2[%c0_1, %c0_2] : memref<32x16xbf16, #tpu.memory_space<vmem>>, vector<32x16xbf16>
    %cst = arith.constant dense<0.000000e+00> : vector<32x128xf32>
    %3 = tpu.matmul %2, %1, %cst {dimension_numbers = #tpu.dot_dimension_numbers<[1], [0], [0], [1], [0, 0, 1, 1], [], []>} : vector<32x16xbf16>, vector<16x128xbf16>, vector<32x128xf32> -> vector<32x128xf32>
    %c0_3 = arith.constant 0 : index
    %c0_4 = arith.constant 0 : index
    %4 = vector.load %arg3[%c0_3, %c0_4] : memref<32x1xf32, #tpu.memory_space<vmem>>, vector<32x1xf32>
    %5 = vector.broadcast %4 : vector<32x1xf32> to vector<32x128xf32>
    %6 = arith.addf %3, %5 : vector<32x128xf32>
    %cst_5 = arith.constant 0.000000e+00 : f32
    %7 = vector.broadcast %cst_5 : f32 to vector<32x128xf32>
    %8 = arith.maximumf %6, %7 : vector<32x128xf32>
    %c0_6 = arith.constant 0 : index
    %c0_7 = arith.constant 0 : index
    %9 = vector.load %arg4[%c0_6, %c0_7] : memref<32x32xbf16, #tpu.memory_space<vmem>>, vector<32x32xbf16>
    %10 = arith.truncf %8 : vector<32x128xf32> to vector<32x128xbf16>
    %cst_8 = arith.constant dense<0.000000e+00> : vector<32x128xf32>
    %11 = tpu.matmul %9, %10, %cst_8 {dimension_numbers = #tpu.dot_dimension_numbers<[1], [0], [0], [1], [0, 0, 1, 1], [], []>} : vector<32x32xbf16>, vector<32x128xbf16>, vector<32x128xf32> -> vector<32x128xf32>
    %c0_9 = arith.constant 0 : index
    %c0_10 = arith.constant 0 : index
    %12 = vector.load %arg5[%c0_9, %c0_10] : memref<32x1xf32, #tpu.memory_space<vmem>>, vector<32x1xf32>
    %13 = vector.broadcast %12 : vector<32x1xf32> to vector<32x128xf32>
    %14 = arith.addf %11, %13 : vector<32x128xf32>
    %cst_11 = arith.constant 0.000000e+00 : f32
    %15 = vector.broadcast %cst_11 : f32 to vector<32x128xf32>
    %16 = arith.maximumf %14, %15 : vector<32x128xf32>
    %c0_12 = arith.constant 0 : index
    %c0_13 = arith.constant 0 : index
    %17 = vector.load %arg6[%c0_12, %c0_13] : memref<8x32xbf16, #tpu.memory_space<vmem>>, vector<8x32xbf16>
    %18 = arith.truncf %16 : vector<32x128xf32> to vector<32x128xbf16>
    %cst_14 = arith.constant dense<0.000000e+00> : vector<8x128xf32>
    %19 = tpu.matmul %17, %18, %cst_14 {dimension_numbers = #tpu.dot_dimension_numbers<[1], [0], [0], [1], [0, 0, 1, 1], [], []>} : vector<8x32xbf16>, vector<32x128xbf16>, vector<8x128xf32> -> vector<8x128xf32>
    %c0_15 = arith.constant 0 : index
    %c0_16 = arith.constant 0 : index
    %20 = vector.load %arg7[%c0_15, %c0_16] : memref<8x1xf32, #tpu.memory_space<vmem>>, vector<8x1xf32>
    %21 = vector.broadcast %20 : vector<8x1xf32> to vector<8x128xf32>
    %22 = arith.addf %19, %21 : vector<8x128xf32>
    %23 = math.tanh %22 : vector<8x128xf32>
    %cst_17 = arith.constant 3.500000e+00 : f32
    %24 = vector.broadcast %cst_17 : f32 to vector<8x128xf32>
    %25 = arith.mulf %24, %23 : vector<8x128xf32>
    %cst_18 = arith.constant -1.500000e+00 : f32
    %26 = vector.broadcast %cst_18 : f32 to vector<8x128xf32>
    %27 = arith.addf %26, %25 : vector<8x128xf32>
    %28 = tpu.iota {dimensions = array<i32: 0>} : vector<8x128xi32>
    %c4_i32 = arith.constant 4 : i32
    %29 = vector.broadcast %c4_i32 : i32 to vector<8x128xi32>
    %30 = arith.cmpi sge, %28, %29 : vector<8x128xi32>
    %31 = arith.select %30, %27, %22 : vector<8x128xi1>, vector<8x128xf32>
    %c0_19 = arith.constant 0 : index
    %c0_20 = arith.constant 0 : index
    %32 = vector.load %arg8[%c0_19, %c0_20] : memref<8x128xf32, #tpu.memory_space<vmem>>, vector<8x128xf32>
    tpu.vector_store %arg8[%c0_19, %c0_20], %31 {strides = array<i32>} : memref<8x128xf32, #tpu.memory_space<vmem>>, vector<8x128xf32>,
    return
  }
  func.func @transform_0(%arg0: i32) -> (i32, i32) {
    %c0_i32 = arith.constant 0 : i32
    %c0_i32_0 = arith.constant 0 : i32
    return %c0_i32, %arg0 : i32, i32
  }
  func.func @transform_1(%arg0: i32) -> (i32, i32) {
    %c0_i32 = arith.constant 0 : i32
    %c0_i32_0 = arith.constant 0 : i32
    %c0_i32_1 = arith.constant 0 : i32
    return %c0_i32, %c0_i32_0 : i32, i32
  }
  func.func @transform_2(%arg0: i32) -> (i32, i32) {
    %c0_i32 = arith.constant 0 : i32
    %c0_i32_0 = arith.constant 0 : i32
    %c0_i32_1 = arith.constant 0 : i32
    return %c0_i32, %c0_i32_0 : i32, i32
  }
  func.func @transform_3(%arg0: i32) -> (i32, i32) {
    %c0_i32 = arith.constant 0 : i32
    %c0_i32_0 = arith.constant 0 : i32
    %c0_i32_1 = arith.constant 0 : i32
    return %c0_i32, %c0_i32_0 : i32, i32
  }
  func.func @transform_4(%arg0: i32) -> (i32, i32) {
    %c0_i32 = arith.constant 0 : i32
    %c0_i32_0 = arith.constant 0 : i32
    %c0_i32_1 = arith.constant 0 : i32
    return %c0_i32, %c0_i32_0 : i32, i32
  }
  func.func @transform_5(%arg0: i32) -> (i32, i32) {
    %c0_i32 = arith.constant 0 : i32
    %c0_i32_0 = arith.constant 0 : i32
    %c0_i32_1 = arith.constant 0 : i32
    return %c0_i32, %c0_i32_0 : i32, i32
  }
  func.func @transform_6(%arg0: i32) -> (i32, i32) {
    %c0_i32 = arith.constant 0 : i32
    %c0_i32_0 = arith.constant 0 : i32
    %c0_i32_1 = arith.constant 0 : i32
    return %c0_i32, %c0_i32_0 : i32, i32
  }
  func.func @transform_7(%arg0: i32) -> (i32, i32) {
    %c0_i32 = arith.constant 0 : i32
    %c0_i32_0 = arith.constant 0 : i32
    return %c0_i32, %arg0 : i32, i32
  }
}

</mosaic_0001>

<bundles_post_ra>
// kernel: actor_forward.1
= control target key start
LH: loop header
LB: loop body
LE: loop exit
PB: predicated region body
PF: predicated region fallthrough
CT: control target
= control target key end

     0   :  { %vm68_vm0 = vcmask 130048   ;;  %v344_v2 = vmov 0   ;;  %vm168_vm1 = vcmask 261120   ;;  %v345_v35 = vmov 0.0   ;;  %s443_s0 = inlined_call_operand.vmem [shape: f32[16,128], index: 0, kind: input, shape index: {}]   ;;  %s444_s1 = inlined_call_operand.vmem [shape: bf16[32,16], index: 1, kind: input, shape index: {}]   ;;  %s445_s2 = inlined_call_operand.vmem [shape: f32[32,1], index: 2, kind: input, shape index: {}]   ;;  %s446_s4 = inlined_call_operand.vmem [shape: f32[32,1], index: 4, kind: input, shape index: {}]   ;;  %s447_s6 = inlined_call_operand.vmem [shape: f32[8,1], index: 6, kind: input, shape index: {}]   ;;  %s448_s3 = inlined_call_operand.vmem [shape: bf16[32,32], index: 3, kind: input, shape index: {}]   ;;  %s449_s5 = inlined_call_operand.vmem [shape: bf16[8,32], index: 5, kind: input, shape index: {}]   ;;  %s450_s7 = inlined_call_operand.vmem [shape: f32[8,128], index: 7, kind: output, shape index: {}]  }
   0x1   :  { %v27_v0 = vld [vmem:[%s443_s0] sm:$0xff]  ;;  %v28_v1 = vld [vmem:[%s443_s0 + $0x8] sm:$0xff]  ;;  %336 = vset.pattern.permute.xlu0 %v344_v2  ;;  %337 = vset.pattern.permute.xlu1 %v344_v2  ;;  %v36_v5 = vld [vmem:[%s445_s2 + $0x10] sm:$0xff]  ;;  %vm346_vm2 = vmmov 0   ;;  %v283_v61 = vlaneseq }
   0x2   :  { %v29_v3 = vpack.c.bf16 %v28_v1, %v27_v0  ;;  %v338_v4 = vld [vmem:[%s444_s1] sm:$0xff]   ;;  %v339_v6 = vld [vmem:[%s444_s1 + $0x8] sm:$0xff]   ;;  %50 = vperm.xlu0 %336, %v36_v5   ;;  %v37_v8 = vld [vmem:[%s445_s2 + $0x18] sm:$0xff] }
   0x3   :  { %313 = vmatprep.mubr.msk.bf16.mxu0 %vm68_vm0, %v338_v4  ;;  %v34_v7 = vld [vmem:[%s445_s2] sm:$0xff]  ;;  %v35_v9 = vld [vmem:[%s445_s2 + $0x8] sm:$0xff]  ;;  %v136_v10 = vld [vmem:[%s446_s4 + $0x10] sm:$0xff]  ;;  %v284_v62 = vshrl.u32 %v283_v61, 7 }
   0x4   :  { %311 = vmatprep.subr.bf16.mxu0 %v29_v3  ;;  %40 = vperm.xlu1 %337, %v34_v7   ;;  %v137_v11 = vld [vmem:[%s446_s4 + $0x18] sm:$0xff]  ;;  %v134_v12 = vld [vmem:[%s446_s4] sm:$0xff]  ;;  %v135_v13 = vld [vmem:[%s446_s4 + $0x8] sm:$0xff] }
   0x5   :  { %312 = vmatpush3.bf16.msra.mxu0 %v29_v3  ;;  %v231_v14 = vld [vmem:[%s447_s6] sm:$0xff]  ;;  %v341_v34 = vld [vmem:[%s448_s3 + $0x8] sm:$0xff]   ;;  %vm285_vm3 = vcmp.ge.s32.totalorder %v284_v62, 4 }
   0x6   :  { %55 = vperm.xlu0 %336, %v37_v8   ;;  %v340_v15 = vld [vmem:[%s448_s3] sm:$0xff]   ;;  %325 = vmatprep.subr.bf16.mxu0 %v345_v35 }
   0x7   :  { %321 = vmatprep.mubr.msk.bf16.mxu1 %vm168_vm1, %v340_v15  ;;  %v228_v54 = vld [vmem:[%s449_s5] sm:$0xf] }
   0x8   :  { %314 = vmatmul.mubr.msk.bf16.vlgmr.msra.gmra.mxu0 %vm68_vm0, %v339_v6  ;;  %45 = vperm.xlu1 %337, %v35_v9  }
   0x9   :  { %329 = vmatprep.mubr.msk.bf16.mxu0 %vm346_vm2, %v345_v35 }
   0xa   :  { %150 = vperm.xlu0 %336, %v136_v10  }
   0xc   :  { %155 = vperm.xlu1 %337, %v137_v11  }
   0xe   :  { %140 = vperm.xlu0 %336, %v134_v12  }
  0x10   :  { %145 = vperm.xlu1 %337, %v135_v13  }
  0x12   :  { %234 = vperm.xlu0 %336, %v231_v14  }
  0x7d   :  { %v51_v16 = vpop.permute.xlu0 %50 }
  0x7f   :  { %v41_v17 = vpop.permute.xlu1 %40 }
  0x81   :  { %v56_v21 = vpop.permute.xlu0 %55 }
  0x83   :  { %v46_v25 = vpop.permute.xlu1 %45 }
  0x85   :  { %v151_v36 = vpop.permute.xlu0 %150 }
  0x87   :  { %v156_v37 = vpop.permute.xlu1 %155 }
  0x89   :  { %v141_v42 = vpop.permute.xlu0 %140 }
  0x8b   :  { %v146_v44 = vpop.permute.xlu1 %145 }
  0x8d   :  { %v235_v55 = vpop.permute.xlu0 %234 }
  0xc8   :  { %v315_v18 = vpop.f32.mrf.mxu0 }
  0xc9   :  { %v118_v20 = vadd.f32 %v315_v18, %v51_v16 }
  0xca   :  { %v109_v19 = vpop.f32.mrf.mxu0 }
  0xcb   :  { %v110_v23 = vadd.f32 %v109_v19, %v41_v17  ;;  %v126_v27 = vmax.f32 %v118_v20, 0.0 }
  0xcc   :  { %v316_v22 = vpop.f32.mrf.mxu0 }
  0xcd   :  { %v121_v24 = vadd.f32 %v316_v22, %v56_v21  ;;  %v124_v30 = vmax.f32 %v110_v23, 0.0 }
  0xce   :  { %v112_v26 = vpop.f32.mrf.mxu0 }
  0xcf   :  { %v127_v28 = vmax.f32 %v121_v24, 0.0  ;;  %v113_v29 = vadd.f32 %v112_v26, %v46_v25 }
  0xd1   :  { %v125_v31 = vmax.f32 %v113_v29, 0.0  ;;  %v133_v32 = vpack.c.bf16 %v127_v28, %v126_v27 }
  0xd3   :  { %v132_v33 = vpack.c.bf16 %v125_v31, %v124_v30  ;;  %317 = vmatprep.subr.bf16.mxu1 %v133_v32 }
  0xd4   :  { %318 = vmatpush3.bf16.msra.mxu1 %v133_v32 }
  0xd5   :  { %319 = vmatprep.subr.bf16.mxu1 %v132_v33 }
  0xd8   :  { %320 = vmatpush3.bf16.msra.mxu1 %v132_v33 }
  0xdb   :  { %322 = vmatmul.mubr.msk.bf16.vlgmr.msra.gmra.mxu1 %vm168_vm1, %v341_v34 }
 0x19b   :  { %v323_v38 = vpop.f32.mrf.mxu1 }
 0x19c   :  { %v218_v40 = vadd.f32 %v323_v38, %v151_v36 }
 0x19d   :  { %v209_v39 = vpop.f32.mrf.mxu1 }
 0x19e   :  { %v226_v46 = vmax.f32 %v218_v40, 0.0  ;;  %v210_v47 = vadd.f32 %v209_v39, %v141_v42 }
 0x19f   :  { %v324_v41 = vpop.f32.mrf.mxu1 }
 0x1a0   :  { %v221_v43 = vadd.f32 %v324_v41, %v156_v37  ;;  %v224_v52 = vmax.f32 %v210_v47, 0.0 }
 0x1a1   :  { %v212_v45 = vpop.f32.mrf.mxu1 }
 0x1a2   :  { %v227_v48 = vmax.f32 %v221_v43, 0.0  ;;  %v213_v49 = vadd.f32 %v212_v45, %v146_v44 }
 0x1a4   :  { %v230_v50 = vpack.c.bf16 %v227_v48, %v226_v46  ;;  %v225_v51 = vmax.f32 %v213_v49, 0.0 }
 0x1a6   :  { %326 = vmatpush3.bf16.msra.mxu0 %v230_v50  ;;  %v229_v53 = vpack.c.bf16 %v225_v51, %v224_v52 }
 0x1a7   :  { %327 = vmatprep.subr.bf16.mxu0 %v345_v35 }
 0x1aa   :  { %328 = vmatpush3.bf16.msra.mxu0 %v229_v53 }
 0x1ad   :  { %330 = vmatmul.mubr.msk.bf16.vlgmr.msra.gmra.mxu0 %vm168_vm1, %v228_v54 }
 0x26d   :  { %v274_v56 = vpop.f32.mrf.mxu0 }
 0x26e   :  { %v275_v57 = vadd.f32 %v274_v56, %v235_v55 }
 0x26f   :  { %v331_v58 = vpop.f32.mrf.mxu0 }
 0x270   :  { %342 = vtanh.f32 %v275_v57 }
 0x271   :  { %v277_v59 = vpop.f32.mrf.mxu0 }
 0x273   :  { %v332_v60 = vpop.f32.mrf.mxu0 }
 0x27d   :  { %v343_v63 = vpop.eup %342 }
 0x27e   :  { %v281_v0 = vmul.f32 3.5, %v343_v63 }
 0x280   :  { %v282_v1 = vadd.f32 -1.5, %v281_v0 }
 0x282   :  { %v286_v2 = vsel %vm285_vm3, %v282_v1, %v275_v57 }
 0x283   :  { %287 = vst [vmem:[%s450_s7] sm:$0xff] %v286_v2 }

</bundles_post_ra>
